<compile_context>
chip_gen: v6e
topology: v6e:2x2x1
jax: 0.10.0
libtpu: 0.0.40
codegen_flags: <defaults>
</compile_context>

<pallas_src>
import functools
from types import SimpleNamespace

import jax
import jax.numpy as jnp
from jax.experimental import pallas as pl
from jax.experimental.pallas import tpu as pltpu

_VMEM_FULL = functools.partial(pl.BlockSpec, memory_space=pltpu.MemorySpace.VMEM)


def _pick_hw_tile(hw, max_tile=2048):
    """Largest multiple-of-128 divisor of hw that is <= max_tile (else full hw)."""
    if hw % 128 != 0:
        return hw
    t = min(max_tile, hw)
    t -= t % 128
    while t >= 128:
        if hw % t == 0:
            return t
        t -= 128
    return hw


# ----------------------------------------------------------------------------
# Kernel 1: net_frame_M head (Linear + sigmoid) -- all N frames in one call
# ----------------------------------------------------------------------------
def _frame_net_kernel(x_ref, w_ref, b_ref, out_ref):
    y = jnp.dot(x_ref[...], w_ref[...], preferred_element_type=jnp.float32) + b_ref[...]
    out_ref[...] = jax.nn.sigmoid(y)        # img_activation = 'sigmoid'


def frame_net(pooled, w, b):
    M = pooled.shape[0]
    C = w.shape[1]
    return pl.pallas_call(
        _frame_net_kernel,
        out_shape=jax.ShapeDtypeStruct((M, C), jnp.float32),
        in_specs=[_VMEM_FULL()] * 3,
        out_specs=_VMEM_FULL(),
    )(pooled, w, b)


# ----------------------------------------------------------------------------
# Kernel 2: fused sound_net + N masks + N energies (one call per outer iter)
#   feat_sound lives only in VMEM/vregs; pred_mag is never materialized,
#   energy = mean(mask * mag_mix_tmp) is accumulated in-kernel across HW tiles.
# ----------------------------------------------------------------------------
def _sound_mask_kernel(cur_ref, mmtmp_ref, ff_ref,
                       w1_ref, b1_ref, w2_ref, b2_ref,
                       masks_ref, en_ref, *, num_mix, inv_hw):
    @pl.when(pl.program_id(0) == 0)
    def _init():
        en_ref[...] = jnp.zeros_like(en_ref)

    B = cur_ref.shape[0]
    C, K = w2_ref.shape

    # net_sound_M on log-magnitude (batched over B, vectorized over the HW tile)
    x = jnp.log(cur_ref[...])                                        # (B, tile)
    hid = jnp.maximum(w1_ref[...][None, :, :] * x[:, None, :]
                      + b1_ref[...][None, :, :], 0.0)                # (B, K, tile)
    w2b = jnp.broadcast_to(w2_ref[...][None, :, :], (B, C, K))
    fs = jnp.einsum('bck,bkh->bch', w2b, hid,
                    preferred_element_type=jnp.float32)              # (B, C, tile)  MXU
    fs = fs + b2_ref[...][None, :, :]

    mmtmp = mmtmp_ref[...]                                           # (B, tile)
    for n in range(num_mix):                                         # N is tiny, static
        # torch.bmm(feat_frame, feat_sound): tiny C contraction -> VPU mul + XLU
        # sublane reduce instead of a 1x32 x 32xHW MXU matmul.
        s = jnp.sum(ff_ref[n][:, :, None] * fs, axis=1)              # (B, tile)
        mask = jax.nn.sigmoid(s)                                     # output_activation
        masks_ref[n] = mask
        # energy = mean over HW of mask * mag_mix_tmp (accumulated across tiles)
        en_ref[n] = en_ref[n] + jnp.sum(mask * mmtmp, axis=1, keepdims=True) * inv_hw


def sound_and_masks(cur_mm, mm_tmp, ff_stack, params, *, max_tile=2048):
    B, HW = cur_mm.shape
    N, _, C = ff_stack.shape
    tile = _pick_hw_tile(HW, max_tile)
    grid = (HW // tile,)
    kernel = functools.partial(_sound_mask_kernel, num_mix=N, inv_hw=1.0 / HW)
    masks, en = pl.pallas_call(
        kernel,
        out_shape=(jax.ShapeDtypeStruct((N, B, HW), jnp.float32),
                   jax.ShapeDtypeStruct((N, B, 1), jnp.float32)),
        grid=grid,
        in_specs=[
            pl.BlockSpec((B, tile), lambda h: (0, h)),                     # cur mag mix
            pl.BlockSpec((B, tile), lambda h: (0, h)),                     # mag_mix_tmp
            pl.BlockSpec(ff_stack.shape, lambda h: (0, 0, 0)),             # feat_frames
            pl.BlockSpec(params['sound_w1'].shape, lambda h: (0, 0)),
            pl.BlockSpec(params['sound_b1'].shape, lambda h: (0, 0)),
            pl.BlockSpec(params['sound_w2'].shape, lambda h: (0, 0)),
            pl.BlockSpec(params['sound_b2'].shape, lambda h: (0, 0)),
        ],
        out_specs=(
            pl.BlockSpec((N, B, tile), lambda h: (0, 0, h)),               # masks
            pl.BlockSpec((N, B, 1), lambda h: (0, 0, 0)),                  # energies (acc)
        ),
        compiler_params=pltpu.CompilerParams(
            dimension_semantics=("arbitrary",)),                           # energy accumulates
    )(cur_mm, mm_tmp, ff_stack,
      params['sound_w1'], params['sound_b1'],
      params['sound_w2'], params['sound_b2'])
    return masks, en[:, :, 0]                                              # (N,B,HW), (N,B)


# ----------------------------------------------------------------------------
# Kernel 3: fused loss (N weighted-L1 terms + 'Minus' residual), weight read once
# ----------------------------------------------------------------------------
def _loss_kernel(pred_ref, gt_ref, w_ref, res_ref, out_ref,
                 *, num_mix, inv_count, with_remain):
    @pl.when(pl.program_id(0) == 0)
    def _init():
        out_ref[...] = jnp.zeros_like(out_ref)

    w = w_ref[...]
    acc = jnp.zeros((1, 1), jnp.float32)
    for n in range(num_mix):
        d = jnp.abs(pred_ref[n] - gt_ref[n]) * w                      # (B, tile)
        s = jnp.sum(jnp.sum(d, axis=1, keepdims=True), axis=0, keepdims=True)
        acc = acc + s * (inv_count * (2.0 ** (n - 1)) / num_mix)
    if with_remain:                                                   # 'Minus' mode term
        rem = jnp.maximum(res_ref[...] - 0.01, 0.0) * w
        sr = jnp.sum(jnp.sum(rem, axis=1, keepdims=True), axis=0, keepdims=True)
        acc = acc + sr * inv_count
    out_ref[...] += acc


def fused_loss(pred_stack, gt_stack, weight, res_src, *, with_remain, max_tile=2048):
    N, B, HW = pred_stack.shape
    tile = _pick_hw_tile(HW, max_tile)
    grid = (HW // tile,)
    kernel = functools.partial(_loss_kernel, num_mix=N,
                               inv_count=1.0 / (B * HW), with_remain=with_remain)
    out = pl.pallas_call(
        kernel,
        out_shape=jax.ShapeDtypeStruct((1, 1), jnp.float32),
        grid=grid,
        in_specs=[
            pl.BlockSpec((N, B, tile), lambda h: (0, 0, h)),
            pl.BlockSpec((N, B, tile), lambda h: (0, 0, h)),
            pl.BlockSpec((B, tile), lambda h: (0, h)),
            pl.BlockSpec((B, tile), lambda h: (0, h)),
        ],
        out_specs=pl.BlockSpec((1, 1), lambda h: (0, 0)),
        compiler_params=pltpu.CompilerParams(
            dimension_semantics=("arbitrary",)),
    )(pred_stack, gt_stack, weight, res_src)
    return out[0, 0]


# ----------------------------------------------------------------------------
# Glue: NetWrapper.forward semantics
# ----------------------------------------------------------------------------
def choose_max(index_record, total_energy, B):
    MIN = -100.0
    te = total_energy
    rows = jnp.arange(B)
    for index in index_record:
        te = te.at[rows, index].set(MIN)
    return jnp.argmax(te, axis=1)


def init_params(key, K=8, C=32, Din=3):
    ks = jax.random.split(key, 5)
    return dict(
        sound_w1=jax.random.normal(ks[0], (K, 1), jnp.float32) * 0.5,
        sound_b1=jax.random.normal(ks[1], (K, 1), jnp.float32) * 0.1,
        sound_w2=jax.random.normal(ks[2], (C, K), jnp.float32) * 0.3,
        sound_b2=jax.random.normal(ks[3], (C, 1), jnp.float32) * 0.1,
        frame_w=jax.random.normal(ks[4], (Din, C), jnp.float32) * 0.5,
        frame_b=jnp.zeros((1, C), jnp.float32),
    )


def netwrapper_forward(params, batch_data, args, mode='Minus'):
    mag_mix = batch_data['mag_mix']          # (B, 1, F, T)
    mags = batch_data['mags']                # list of N (B, 1, F, T)
    frames = batch_data['frames']            # list of N (B, 3, Tf, Hi, Wi)

    N = args.num_mix
    B, _, F_, T_ = mag_mix.shape
    HW = F_ * T_

    mm = mag_mix.reshape(B, HW) + 1e-10      # mag_mix = mag_mix + 1e-10
    mm_tmp = mm                              # mag_mix_tmp = mag_mix.clone()

    # weight (weighted_loss=True)
    if args.weighted_loss:
        weight = jnp.clip(jnp.log1p(mm), 0.001, 10.0)
    else:
        weight = jnp.ones_like(mm)

    # gt masks (binary_mask=False -> ratio mask clamped to [0, 2])
    if args.binary_mask:
        gt_masks = [(mags[n].reshape(B, HW) > 0.5 * mm).astype(jnp.float32) for n in range(N)]
    else:
        gt_masks = [jnp.clip(mags[n].reshape(B, HW) / mm, 0.0, 2.0) for n in range(N)]

    # frame features: forward_multiframe ~ global pool (glue) + Linear + sigmoid
    pooled = jnp.stack([jnp.mean(frames[n], axis=(2, 3, 4)) for n in range(N)], axis=0)  # (N,B,3)
    ff_stack = frame_net(pooled.reshape(N * B, -1),
                         params['frame_w'], params['frame_b']).reshape(N, B, -1)          # (N,B,C)

    index_record = []
    ordered_masks = []
    cur_mm = mm
    res_src = cur_mm
    batch_idx = jnp.arange(B)

    for n in range(N):
        res_src = cur_mm                     # torch's log_mag_mix source of this iteration
        # one fused kernel: sound_net + N candidate masks + N energies
        masks, energies = sound_and_masks(cur_mm, mm_tmp, ff_stack, params)  # (N,B,HW),(N,B)
        total_energy = energies.T                                            # (B, N)
        cur_index = choose_max(index_record, total_energy, B)
        index_record.append(cur_index)

        om = masks[cur_index, batch_idx]                                     # (B, HW)
        ordered_masks.append(om)
        cur_mm = cur_mm - cur_mm * om + 1e-10                                # subtract component

    index_record = jnp.stack(index_record, axis=1)         # (B, N)
    total_masks = jnp.stack(ordered_masks, axis=1)         # (B, N, HW)

    unordered_masks = []
    for n in range(N):
        col = jnp.argmax((index_record == n).astype(jnp.int32), axis=1)      # one hit per row
        m = total_masks[batch_idx, col]
        unordered_masks.append(m if args.binary_mask else m * 2.0)           # *2 for ratio masks

    # loss (need_loss_ratio=True): N weighted-L1 terms + err_remain, one kernel.
    # res_src is exp(log(mag_mix)) of the last iteration -- identity removed.
    pred_stack = jnp.stack(unordered_masks, axis=0)        # (N, B, HW)
    gt_stack = jnp.stack(gt_masks, axis=0)                 # (N, B, HW)
    err = fused_loss(pred_stack, gt_stack, weight, res_src,
                     with_remain=('Minus' in mode))

    outputs = {
        'pred_masks': [m.reshape(B, 1, F_, T_) for m in unordered_masks],
        'gt_masks': [g.reshape(B, 1, F_, T_) for g in gt_masks],
        'mag_mix': cur_mm.reshape(B, 1, F_, T_),
        'mags': mags,
        'weight': weight.reshape(B, 1, F_, T_),
    }
    return err, outputs


if __name__ == "__main__":
    args = SimpleNamespace(num_mix=2, log_freq=False, weighted_loss=True,
                           binary_mask=False, mask_thres=0.5, need_loss_ratio=True)

    key = jax.random.PRNGKey(0)
    k1, k2, k3, k4, k5, k6 = jax.random.split(key, 6)

    B, F_, T_ = 2, 16, 16
    mag_mix = jax.random.uniform(k1, (B, 1, F_, T_), jnp.float32, 0.05, 1.0)
    mags = [jax.random.uniform(k2, (B, 1, F_, T_), jnp.float32, 0.0, 1.0),
            jax.random.uniform(k3, (B, 1, F_, T_), jnp.float32, 0.0, 1.0)]
    frames = [jax.random.normal(k4, (B, 3, 2, 8, 8), jnp.float32),
              jax.random.normal(k5, (B, 3, 2, 8, 8), jnp.float32)]

    params = init_params(k6)
    batch = {'mag_mix': mag_mix, 'mags': mags, 'frames': frames}

    err, outputs = netwrapper_forward(params, batch, args, mode='Minus')
    jax.block_until_ready(err)
    jax.block_until_ready(outputs['pred_masks'][0])
    print("KERNEL_OK")
</pallas_src>

<mosaic_0001>
module attributes {stable_mosaic.version = 11 : i64} {
  func.func @_frame_net_kernel(%arg0: memref<4x3xf32, #tpu.memory_space<vmem>>, %arg1: memref<3x32xf32, #tpu.memory_space<vmem>>, %arg2: memref<1x32xf32, #tpu.memory_space<vmem>>, %arg3: memref<4x32xf32, #tpu.memory_space<vmem>>) attributes {dimension_semantics = [], scalar_prefetch = 0 : i64, scratch_operands = 0 : i64, tpu.core_type = #tpu.core_type<tc>} {
    %c0 = arith.constant 0 : index
    %c0_0 = arith.constant 0 : index
    %0 = vector.load %arg0[%c0, %c0_0] : memref<4x3xf32, #tpu.memory_space<vmem>>, vector<4x3xf32>
    %c0_1 = arith.constant 0 : index
    %c0_2 = arith.constant 0 : index
    %1 = vector.load %arg1[%c0_1, %c0_2] : memref<3x32xf32, #tpu.memory_space<vmem>>, vector<3x32xf32>
    %cst = arith.constant dense<0.000000e+00> : vector<4x32xf32>
    %2 = tpu.matmul %0, %1, %cst {dimension_numbers = #tpu.dot_dimension_numbers<[1], [0], [0], [1], [0, 0, 1, 1], [], []>} : vector<4x3xf32>, vector<3x32xf32>, vector<4x32xf32> -> vector<4x32xf32>
    %c0_3 = arith.constant 0 : index
    %c0_4 = arith.constant 0 : index
    %3 = vector.load %arg2[%c0_3, %c0_4] : memref<1x32xf32, #tpu.memory_space<vmem>>, vector<1x32xf32>
    %4 = vector.broadcast %3 : vector<1x32xf32> to vector<4x32xf32>
    %5 = arith.addf %2, %4 : vector<4x32xf32>
    %6 = arith.negf %5 : vector<4x32xf32>
    %7 = math.exp %6 : vector<4x32xf32>
    %cst_5 = arith.constant 1.000000e+00 : f32
    %8 = vector.broadcast %cst_5 : f32 to vector<4x32xf32>
    %9 = arith.addf %8, %7 : vector<4x32xf32>
    %10 = arith.divf %8, %9 : vector<4x32xf32>
    %c0_6 = arith.constant 0 : index
    %c0_7 = arith.constant 0 : index
    %11 = vector.load %arg3[%c0_6, %c0_7] : memref<4x32xf32, #tpu.memory_space<vmem>>, vector<4x32xf32>
    tpu.vector_store %arg3[%c0_6, %c0_7], %10 {strides = array<i32>} : memref<4x32xf32, #tpu.memory_space<vmem>>, vector<4x32xf32>,
    return
  }
}

</mosaic_0001>

<bundles_post_ra>
// kernel: tpu_custom_call.1
= control target key start
LH: loop header
LB: loop body
LE: loop exit
PB: predicated region body
PF: predicated region fallthrough
CT: control target
= control target key end

     0   :  { %8 = vsyncpa [#allocation3], 0  ;;  %s273_s0 = inlined_call_operand.hbm [shape: f32[4,3], index: 0, kind: input, shape index: {}]   ;;  %s274_s1 = inlined_call_operand.hbm [shape: f32[3,32], index: 1, kind: input, shape index: {}]   ;;  %s275_s2 = inlined_call_operand.vmem [shape: f32[1,32], index: 2, kind: input, shape index: {}]   ;;  %s276_s3 = inlined_call_operand.hbm [shape: f32[4,32], index: 3, kind: output, shape index: {}]  }
   0x1   :  { %9 = vsyncpa [#allocation6], 0 }
   0x2   :  { %10 = vsyncpa [#allocation4], 0  ;;  %s236_s12 = smov [#allocation2]   ;;  %s237_s14 = smov [#allocation5]  }
   0x3   :  { %s17_s13 = sshll.u32 %s236_s12, 4  ;;  %s27_s15 = sshll.u32 %s237_s14, 4  ;;  %s18_s13 = int_to_ptr.vmem [resolvable:$true] %s17_s13  ;;  %s28_s15 = int_to_ptr.vmem [resolvable:$true] %s27_s15 }
   0x4   :  { %s178_s16 = scalar_lea.vmem %s18_s13, 64  ;;  %p183_p1 = scmp.lt.s32.totalorder %s18_s13, %s18_s13 }
   0x5   :  { %p179_p0 = scmp.ne.s32.totalorder %s18_s13, %s178_s16  ;;  %p184_p2 = scmp.lt.s32.totalorder %s178_s16, %s178_s16 }
   0x7   :  { %p185_p3 = por %p184_p2, %p183_p1 }
   0x9   :  { %p186_p4 = pnand %p185_p3, %p179_p0 }
   0xb   :  { %189 = shalt.err (!%p186_p4)
}
   0xc   :  { %20 = dma.hbm_to_vmem [thread:$0]  %s273_s0, 64, %s18_s13, [#allocation3]  }
   0xd   :  { %s198_s19 = scalar_lea.vmem %s28_s15, 64  ;;  %p203_p6 = scmp.lt.s32.totalorder %s28_s15, %s28_s15 }
   0xe   :  { %p199_p5 = scmp.ne.s32.totalorder %s28_s15, %s198_s19  ;;  %p204_p7 = scmp.lt.s32.totalorder %s198_s19, %s198_s19 }
  0x10   :  { %p205_p8 = por %p204_p7, %p203_p6 }
  0x12   :  { %p206_p9 = pnand %p205_p8, %p199_p5 }
  0x14   :  { %209 = shalt.err (!%p206_p9)
}
  0x15   :  { %30 = dma.hbm_to_vmem [thread:$0]  %s274_s1, 64, %s28_s15, [#allocation6]  }
  0x16   :  { %230 = dma.done.wait [#allocation3], 64  }
  0x17   :  { %231 = vsyncadd [#allocation3], 4294967232 }
  0x18   :  { %232 = dma.done.wait [#allocation6], 64  }
  0x19   :  { %233 = vsyncadd [#allocation6], 4294967232  ;;  %v238_v0 = vmov 0.0   ;;  %vm239_vm0 = vmmov 0   ;;  %vm52_vm1 = vcmask 1042432   ;;  %vm48_vm2 = vcmask 23552  }
  0x1a   :  { %156 = vmatprep.subr.mxu0 %v238_v0  ;;  %158 = vmatprep.mubr.msk.f32.mxu0 %vm239_vm0, %v238_v0  ;;  %v40_v1 = vld [vmem:[#allocation5] sm:$0x7]  ;;  %v39_v2 = vld [vmem:[#allocation2] sm:$0xf]  ;;  %s240_s1 = smov [#allocation7]   ;;  %vm132_vm3 = vcmask 257024  }
  0x1b   :  { %157 = vmatpush3.msk.msra.mxu0 %vm52_vm1, %v40_v1  ;;  %v150_v3 = vld [vmem:[%s275_s2] ss:$0 sm:$0xff]  ;;  %s140_s23 = sshll.u32 %s240_s1, 4  ;;  %s141_s23 = int_to_ptr.vmem [resolvable:$true] %s140_s23 }
  0x1c   :  { %159 = vmatmul.mubr.msk.f32.vlgmr.msra.gmra.mxu0 %vm48_vm2, %v39_v2  ;;  %s210_s24 = scalar_lea.vmem %s141_s23, 64  ;;  %p215_p11 = scmp.lt.s32.totalorder %s141_s23, %s141_s23 }
  0x1d   :  { %p211_p10 = scmp.ne.s32.totalorder %s141_s23, %s210_s24  ;;  %p216_p12 = scmp.lt.s32.totalorder %s210_s24, %s210_s24 }
  0x1f   :  { %p217_p13 = por %p216_p12, %p215_p11 }
  0x21   :  { %p218_p0 = pnand %p217_p13, %p211_p10 }
  0xdc   :  { %v122_v4 = vpop.f32.mrf.mxu0 }
  0xdd   :  { %v123_v5 = vadd.f32 %v150_v3, %v122_v4 }
  0xde   :  { %v160_v6 = vpop.f32.mrf.mxu0 }
  0xdf   :  { %v153_v7 = vmul.f32 -1.442695, %v123_v5 }
  0xe1   :  { %166 = vpow2.f32 %v153_v7 }
  0xee   :  { %v167_v8 = vpop.eup %166 }
  0xef   :  { %v129_v9 = vadd.f32 1.0, %v167_v8 }
  0xf1   :  { %168 = vrcp.f32 %v129_v9 }
  0xfe   :  { %v169_v10 = vpop.eup %168 }
  0xff   :  { %133 = vst.msk [vmem:[#allocation7] sm:$0xf] %vm132_vm3, %v169_v10 }
 0x100   :  { %221 = shalt.err (!%p218_p0)
}
 0x101   :  { %143 = dma.vmem_to_hbm [thread:$0]  %s141_s23, 64, %s276_s3, [#allocation4]  }
 0x102   :  { %234 = dma.done.wait [#allocation4], 64  }
 0x103   :  { %235 = vsyncadd [#allocation4], 4294967232 }
 0x104   :  { %147 = vsyncpa [#allocation3], 1 }
 0x105   :  { %148 = vsyncpa [#allocation6], 1 }
 0x106   :  { %149 = vsyncpa [#allocation4], 1 }

</bundles_post_ra>
